<compile_context>
chip_gen: v6e
topology: v6e:2x2x1
jax: 0.10.0
libtpu: 0.0.40
codegen_flags: <defaults>
</compile_context>

<pallas_src>
import jax
import jax.numpy as jnp
from jax import lax
from jax.experimental import pallas as pl
from jax.experimental.pallas import tpu as pltpu


def _round_up(x: int, m: int) -> int:
    return ((x + m - 1) // m) * m


# --------------------------------------------------------------------------
# Kernels
# --------------------------------------------------------------------------
def _make_single_pass_kernel(temperature: float, tile_rows: int):
    """One class pass per row tile: the whole [TM, C] row block is reduced at once."""
    T = float(temperature)
    invT = 1.0 / T
    unit_T = (T == 1.0)

    def kernel(x_ref, o_ref):
        # t = x / T  (constant-reciprocal multiply; upcast in-kernel only)
        t = x_ref[...].astype(jnp.float32) * invT            # [TM, C]
        m1 = jnp.max(t, axis=-1, keepdims=True)               # [TM, 1]
        z = t - m1
        u = jnp.exp(z)
        s1 = jnp.sum(u, axis=-1, keepdims=True)                # softmax(x/T) denom
        if unit_T:
            w, s2 = u, s1                                      # T == 1: reuse exp/sum
        else:
            w = jnp.exp(z * invT)                              # numer of softmax(L/T)
            s2 = jnp.sum(w, axis=-1, keepdims=True)
        # sum(L*S) per row = sum(z*w)/s2 - log(s1)   (log_p never materialized)
        a = jnp.sum(z * w, axis=-1, keepdims=True)             # [TM, 1]
        # Per-row divide is a [TM,1] vector (TM/8 vregs) -> exact reciprocal is
        # already off the critical slot; keeps the 1e-5 accuracy budget intact.
        o_ref[...] = a * pl.reciprocal(s2, approx=False) - jnp.log(s1)

    return kernel


def _make_class_tiled_kernel(temperature: float, n_cols: int,
                             tile_cols: int):
    """Class-tiled online reduction: running (max, s1, s2, sum(z*w)) per row."""
    T = float(temperature)
    invT = 1.0 / T
    unit_T = (T == 1.0)
    col_rem = (n_cols % tile_cols) != 0

    def kernel(x_ref, o_ref, m_sc, s1_sc, s2_sc, a_sc):
        k = pl.program_id(1)
        nk = pl.num_programs(1)

        t = x_ref[...].astype(jnp.float32) * invT              # [TM, TC]
        if col_rem:
            cid = k * tile_cols + lax.broadcasted_iota(jnp.int32, t.shape, 1)
            col_ok = cid < n_cols
            t = jnp.where(col_ok, t, -jnp.inf)                 # dead cols never win max

        m_loc = jnp.max(t, axis=-1, keepdims=True)             # finite for real rows
        z = t - m_loc
        u = jnp.exp(z)
        w = u if unit_T else jnp.exp(z * invT)
        zw = z * w
        if col_rem:
            zw = jnp.where(col_ok, zw, 0.0)                    # kill (-inf)*0 NaNs
        s1_loc = jnp.sum(u, axis=-1, keepdims=True)
        s2_loc = s1_loc if unit_T else jnp.sum(w, axis=-1, keepdims=True)
        a_loc = jnp.sum(zw, axis=-1, keepdims=True)

        @pl.when(k == 0)
        def _init():
            m_sc[...] = m_loc
            s1_sc[...] = s1_loc
            s2_sc[...] = s2_loc
            a_sc[...] = a_loc

        @pl.when(k != 0)
        def _accumulate():
            m_old = m_sc[...]
            m_new = jnp.maximum(m_old, m_loc)
            d_o = m_old - m_new                                # <= 0, finite
            d_l = m_loc - m_new                                # <= 0, finite
            e1_o = jnp.exp(d_o)
            e1_l = jnp.exp(d_l)
            if unit_T:
                e2_o, e2_l = e1_o, e1_l
            else:
                e2_o = jnp.exp(d_o * invT)
                e2_l = jnp.exp(d_l * invT)
            s2_o = e2_o * s2_sc[...]
            s2_l = e2_l * s2_loc
            m_sc[...] = m_new
            s1_sc[...] = e1_o * s1_sc[...] + e1_l * s1_loc
            s2_sc[...] = s2_o + s2_l
            # a tracks sum (t - m_run) * exp((t - m_run)/T); rescale both terms.
            a_sc[...] = (e2_o * a_sc[...] + d_o * s2_o) + (e2_l * a_loc + d_l * s2_l)

        @pl.when(k == nk - 1)
        def _finalize():
            o_ref[...] = (a_sc[...] * pl.reciprocal(s2_sc[...], approx=False)
                          - jnp.log(s1_sc[...]))

    return kernel


# --------------------------------------------------------------------------
# Tile planning
# --------------------------------------------------------------------------
def _plan(n_rows: int, n_cols: int, itemsize: int, budget_bytes: int):
    """Pick (tile_rows, tile_cols); tile_cols == n_cols means a single class pass."""
    # VMEM bytes per (row, class) element of one block:
    #   double-buffered input (2 x itemsize) + ~5 live f32 intermediates.
    per_elem = 2 * itemsize + 5 * 4

    if n_rows <= 8:
        tm = n_rows                                   # full-dim row block
    else:
        n_pad = _round_up(n_rows, 8)
        # >= 4 row tiles when the batch allows it (pipeline overlap + v7x megacore),
        # capped at 1024 rows; multiple of 8.
        tm = max(8, min(1024, _round_up(-(-n_pad // 4), 8)))
        tm = min(tm, n_pad)

    # Single class pass if it fits the per-block budget (shrink rows first).
    if tm * n_cols * per_elem <= budget_bytes:
        return tm, n_cols
    if n_rows > 8:
        tm_fit = (budget_bytes // (n_cols * per_elem)) // 8 * 8
        if tm_fit >= 8:
            return int(min(tm, tm_fit)), n_cols

    # Class dim too wide: tile it (lane tiles are multiples of 128); footprint
    # becomes O(tm x tc) independent of n_cols.
    if n_rows > 8:
        tm = min(tm, 256)
    tc = (budget_bytes // (tm * per_elem)) // 128 * 128
    tc = max(128, min(tc, _round_up(n_cols, 128)))
    if tc >= n_cols:
        return int(tm), n_cols
    return int(tm), int(tc)


# --------------------------------------------------------------------------
# Wrapper
# --------------------------------------------------------------------------
def e_loss(output_batch, teacher_outputs=None, temperature: float = 1.0,
           *, vmem_budget_bytes: int | None = None):
    """Pallas TPU implementation of E_Loss.forward. Returns a scalar f32.

    `teacher_outputs` is accepted for API parity but (as in the PyTorch module)
    unused.  `vmem_budget_bytes` is a test/tuning knob for the per-block VMEM
    budget (defaults to 16 MiB, safe on every TPU generation).
    """
    assert output_batch.ndim == 2, "expected [N, C] logits"
    N, C = output_batch.shape
    T = float(temperature)
    itemsize = jnp.dtype(output_batch.dtype).itemsize
    budget = int(vmem_budget_bytes) if vmem_budget_bytes else 16 * 1024 * 1024

    tm, tc = _plan(N, C, itemsize, budget)
    multi = tc < C
    grid_rows = pl.cdiv(N, tm)

    if multi:
        kernel = _make_class_tiled_kernel(T, C, tc)
        grid = (grid_rows, pl.cdiv(C, tc))
        in_specs = [pl.BlockSpec((tm, tc), lambda i, k: (i, k))]
        out_specs = pl.BlockSpec((tm, 1), lambda i, k: (i, 0))
        scratch = [pltpu.VMEM((tm, 1), jnp.float32) for _ in range(4)]
        dims = ("parallel", "arbitrary")          # class (reduction) axis last
    else:
        kernel = _make_single_pass_kernel(T, tm)
        grid = (grid_rows,)
        in_specs = [pl.BlockSpec((tm, C), lambda i: (i, 0))]
        out_specs = pl.BlockSpec((tm, 1), lambda i: (i, 0))
        scratch = []
        dims = ("parallel",)

    # Explicit scoped-VMEM limit sized from the actual tile (+ headroom for the
    # double-buffered output block and compiler scratch).
    scratch_bytes = (4 * tm * 128 * 4) if multi else 0
    block_bytes = tm * tc * (2 * itemsize + 6 * 4)
    vmem_limit = int(min(56 * 1024 * 1024,
                         max(block_bytes + scratch_bytes + (4 << 20),
                             32 * 1024 * 1024)))

    partials = pl.pallas_call(
        kernel,
        out_shape=jax.ShapeDtypeStruct((N, 1), jnp.float32),
        grid_spec=pltpu.PrefetchScalarGridSpec(
            num_scalar_prefetch=0,
            grid=grid,
            in_specs=in_specs,
            out_specs=out_specs,
            scratch_shapes=scratch,
        ),
        compiler_params=pltpu.CompilerParams(
            dimension_semantics=dims,
            vmem_limit_bytes=vmem_limit,
        ),
    )(output_batch)

    scale = -(T * T) / float(N)                  # fold -T*T and 1/N into one constant
    return (scale * jnp.sum(partials)).astype(jnp.float32)


# --------------------------------------------------------------------------
# Reference + self-test
# --------------------------------------------------------------------------
def _e_loss_reference(x, T=1.0):
    # Pure-JAX reference mirroring the PyTorch code.
    L = jax.nn.log_softmax(x.astype(jnp.float32) / T, axis=1)
    S = jax.nn.softmax(L / T, axis=1)
    return -T * T * jnp.sum(L * S) / x.shape[0]


if __name__ == "__main__":
    key = jax.random.PRNGKey(0)
    ks = jax.random.split(key, 8)

    def check(x, T, budget=None, tol=1e-5):
        got = jax.block_until_ready(
            e_loss(x, None, temperature=T, vmem_budget_bytes=budget))
        want = _e_loss_reference(x, T)
        ok = bool(jnp.allclose(got, want, rtol=tol, atol=tol))
        if not ok:
            print("MISMATCH", tuple(x.shape), str(x.dtype), T, budget,
                  float(got), float(want))
        return ok

    ok = True
    # Classifier-head sized logits: batch=8, classes=128.
    x0 = jax.random.normal(ks[0], (8, 128), dtype=jnp.float32)
    ok &= check(x0, 1.0)                      # T==1 fast path, single class pass
    ok &= check(x0, 2.0)                      # general-T path
    # Multi row-tile grid with a partial (padded) last row tile.
    x1 = jax.random.normal(ks[1], (40, 256), dtype=jnp.float32)
    ok &= check(x1, 2.0)
    # bf16 logits (narrow dtype on the HBM->VMEM copy, f32 in-kernel).
    x2 = jax.random.normal(ks[2], (16, 128), dtype=jnp.float32).astype(jnp.bfloat16)
    ok &= check(x2, 1.0)
    # Force the class-tiled online path via a tiny per-block budget override.
    x3 = jax.random.normal(ks[3], (12, 384), dtype=jnp.float32)
    ok &= check(x3, 1.0, budget=48 * 1024)    # exact class split + padded row tile
    ok &= check(x3, 2.0, budget=48 * 1024)
    x4 = jax.random.normal(ks[4], (8, 300), dtype=jnp.float32)
    ok &= check(x4, 2.0, budget=48 * 1024)    # padded class tile (column-mask path)

    if ok:
        print("KERNEL_OK")
</pallas_src>

<mosaic_0001>
module attributes {stable_mosaic.version = 11 : i64} {
  func.func @kernel(%arg0: i32, %arg1: memref<8x128xf32, #tpu.memory_space<vmem>>, %arg2: memref<8x1xf32, #tpu.memory_space<vmem>>) attributes {dimension_semantics = [#tpu.dimension_semantics<parallel>], iteration_bounds = array<i64: 1>, scalar_prefetch = 0 : i64, scratch_operands = 0 : i64, tpu.core_type = #tpu.core_type<tc>, window_params = [{transform_indices = @transform_0, window_bounds = array<i64: 8, 128>}, {transform_indices = @transform_1, window_bounds = array<i64: 8, 1>}]} {
    %c0 = arith.constant 0 : index
    %c0_0 = arith.constant 0 : index
    %0 = vector.load %arg1[%c0, %c0_0] : memref<8x128xf32, #tpu.memory_space<vmem>>, vector<8x128xf32>
    %cst = arith.constant 1.000000e+00 : f32
    %1 = vector.broadcast %cst : f32 to vector<8x128xf32>
    %2 = arith.mulf %0, %1 : vector<8x128xf32>
    %cst_1 = arith.constant dense<0xFF800000> : vector<8xf32>
    %3 = vector.multi_reduction <maximumf>, %2, %cst_1 [1] : vector<8x128xf32> to vector<8xf32>
    %4 = vector.shape_cast %3 : vector<8xf32> to vector<8x1xf32>
    %5 = vector.broadcast %4 : vector<8x1xf32> to vector<8x128xf32>
    %6 = arith.subf %2, %5 : vector<8x128xf32>
    %7 = math.exp %6 : vector<8x128xf32>
    %cst_2 = arith.constant dense<0.000000e+00> : vector<8xf32>
    %8 = vector.multi_reduction <add>, %7, %cst_2 [1] : vector<8x128xf32> to vector<8xf32>
    %9 = vector.shape_cast %8 : vector<8xf32> to vector<8x1xf32>
    %10 = arith.mulf %6, %7 : vector<8x128xf32>
    %cst_3 = arith.constant dense<0.000000e+00> : vector<8xf32>
    %11 = vector.multi_reduction <add>, %10, %cst_3 [1] : vector<8x128xf32> to vector<8xf32>
    %12 = vector.shape_cast %11 : vector<8xf32> to vector<8x1xf32>
    %13 = tpu.reciprocal %9 : vector<8x1xf32> -> vector<8x1xf32>
    %14 = arith.mulf %12, %13 : vector<8x1xf32>
    %15 = math.log %9 : vector<8x1xf32>
    %16 = arith.subf %14, %15 : vector<8x1xf32>
    %c0_4 = arith.constant 0 : index
    %c0_5 = arith.constant 0 : index
    %17 = vector.load %arg2[%c0_4, %c0_5] : memref<8x1xf32, #tpu.memory_space<vmem>>, vector<8x1xf32>
    tpu.vector_store %arg2[%c0_4, %c0_5], %16 {strides = array<i32>} : memref<8x1xf32, #tpu.memory_space<vmem>>, vector<8x1xf32>,
    return
  }
  func.func @transform_0(%arg0: i32) -> (i32, i32) {
    %c0_i32 = arith.constant 0 : i32
    %c0_i32_0 = arith.constant 0 : i32
    return %arg0, %c0_i32 : i32, i32
  }
  func.func @transform_1(%arg0: i32) -> (i32, i32) {
    %c0_i32 = arith.constant 0 : i32
    %c0_i32_0 = arith.constant 0 : i32
    return %arg0, %c0_i32 : i32, i32
  }
}

</mosaic_0001>

<bundles_post_ra>
// kernel: tpu_custom_call.1
= control target key start
LH: loop header
LB: loop body
LE: loop exit
PB: predicated region body
PF: predicated region fallthrough
CT: control target
= control target key end

     0   :  { %6 = vsyncpa [#allocation3], 0  ;;  %s72_s6 = smov [#allocation2]   ;;  %s89_s0 = inlined_call_operand.hbm [shape: f32[8,128], index: 0, kind: input, shape index: {}]   ;;  %s90_s1 = inlined_call_operand.vmem [shape: f32[8,1], index: 1, kind: output, shape index: {}]  }
   0x1   :  { %s13_s7 = sshll.u32 %s72_s6, 4  ;;  %s14_s7 = int_to_ptr.vmem [resolvable:$true] %s13_s7 }
   0x2   :  { %s58_s8 = scalar_lea.vmem %s14_s7, 128  ;;  %p63_p1 = scmp.lt.s32.totalorder %s14_s7, %s14_s7 }
   0x3   :  { %p59_p0 = scmp.ne.s32.totalorder %s14_s7, %s58_s8  ;;  %p64_p2 = scmp.lt.s32.totalorder %s58_s8, %s58_s8 }
   0x5   :  { %p65_p3 = por %p64_p2, %p63_p1 }
   0x7   :  { %p66_p4 = pnand %p65_p3, %p59_p0 }
   0x9   :  { %69 = shalt.err (!%p66_p4)
}
   0xa   :  { %16 = dma.hbm_to_vmem [thread:$0]  %s89_s0, 128, %s14_s7, [#allocation3]  }
   0xb   :  { %70 = dma.done.wait [#allocation3], 128  }
   0xc   :  { %71 = vsyncadd [#allocation3], 4294967168  ;;  %v20_v0 = vld [vmem:[#allocation2] sm:$0xff]  ;;  %vm36_vm0 = vcmask 7168  }
   0xd   :  { %21 = vmax.xlane.f32.xlu0 %v20_v0 }
  0x96   :  { %v22_v1 = vpop.xlane.xlu0 %21 }
  0x97   :  { %v23_v2 = vsub.f32 %v20_v0, %v22_v1 }
  0x99   :  { %v24_v3 = vmul.f32 1.442695, %v23_v2 }
  0x9b   :  { %44 = vpow2.f32 %v24_v3 }
  0xa8   :  { %v45_v4 = vpop.eup %44 }
  0xa9   :  { %26 = vadd.xlane.f32.xlu0 %v45_v4  ;;  %v28_v5 = vmul.f32 %v45_v4, %v23_v2 }
  0xab   :  { %29 = vadd.xlane.f32.xlu1 %v28_v5 }
 0x132   :  { %v27_v6 = vpop.xlane.xlu0 %26 }
 0x133   :  { %46 = vrcp.f32 %v27_v6 }
 0x134   :  { %48 = vlog2.f32 %v27_v6  ;;  %v30_v8 = vpop.xlane.xlu1 %29 }
 0x140   :  { %v47_v7 = vpop.eup %46 }
 0x141   :  { %v49_v9 = vpop.eup %48  ;;  %v32_v10 = vmul.f32 %v47_v7, %v30_v8 }
 0x142   :  { %v34_v11 = vmul.f32 0.6931472, %v49_v9 }
 0x144   :  { %v35_v12 = vsub.f32 %v32_v10, %v34_v11 }
 0x146   :  { %37 = vst.msk [vmem:[%s90_s1] sm:$0xff] %vm36_vm0, %v35_v12 }
 0x147   :  { %42 = vsyncpa [#allocation3], 1 }

</bundles_post_ra>
